<compile_context>
chip_gen: v7x
topology: tpu7x:2x2x1
jax: 0.10.0
libtpu: 0.0.40
codegen_flags: <defaults>
</compile_context>

<pallas_src>
import jax
import jax.numpy as jnp
from jax.experimental import pallas as pl
from jax.experimental.pallas import tpu as pltpu

TOKENS_PER_BLOCK = 256  # sublane-aligned (x8) and MXU-sized token tile


def _round_up(n, m):
    return ((n + m - 1) // m) * m


def embed_kernel(idx_ref, w_ref, o_ref):
    # idx_ref: VMEM (TPB, 1) int32       -- token ids for this block
    # w_ref:   VMEM (ntoken, emb_dim)    -- full embedding table (resident)
    # o_ref:   VMEM (TPB, emb_dim)       -- gathered rows
    ntoken = w_ref.shape[0]
    tpb = idx_ref.shape[0]

    ids = idx_ref[...]                                   # (TPB, 1) int32
    # padding_idx=-1 normalises to row ntoken-1; clamp everything into range
    # so a bad id can never turn into a silent OOB VMEM read.
    ids = jnp.where(ids < 0, ntoken - 1, ids)
    ids = jnp.clip(ids, 0, ntoken - 1)

    # One-hot gather on the MXU: (TPB, ntoken) @ (ntoken, emb_dim).
    vocab_iota = jax.lax.broadcasted_iota(jnp.int32, (tpb, ntoken), 1)
    one_hot = (vocab_iota == ids).astype(w_ref.dtype)
    o_ref[...] = jnp.dot(
        one_hot,
        w_ref[...],
        preferred_element_type=jnp.float32,
        precision=jax.lax.Precision.HIGHEST,
    ).astype(o_ref.dtype)


def word_embedding(x, emb_weight, tokens_per_block=TOKENS_PER_BLOCK):
    """Pallas equivalent of WordEmbedding.forward (dropout p=0.0 => identity)."""
    B, L = x.shape
    ntoken, emb_dim = emb_weight.shape
    N = B * L

    # Token tile: as large as tokens_per_block, but never bigger than the
    # (8-rounded) number of tokens, so tiny inputs stay a single small block.
    tpb = min(tokens_per_block, _round_up(N, 8))
    n_pad = _round_up(N, tpb)

    flat_idx = x.reshape(N).astype(jnp.int32)
    if n_pad != N:
        # padded slots gather row 0; they are sliced away below.
        flat_idx = jnp.pad(flat_idx, (0, n_pad - N))
    idx2d = flat_idx.reshape(n_pad, 1)

    # Explicit scoped-VMEM budget: table (x2 for safety) + idx/out double
    # buffers + one-hot intermediate, with headroom; clipped to sane bounds.
    itemsize = jnp.dtype(emb_weight.dtype).itemsize
    table_bytes = ntoken * emb_dim * itemsize
    out_blk_bytes = tpb * emb_dim * 4
    onehot_bytes = tpb * max(ntoken, 128) * 4
    needed = 2 * table_bytes + 2 * out_blk_bytes + onehot_bytes + (4 << 20)
    vmem_bytes = int(min(max(needed, 32 << 20), 100 << 20))

    out = pl.pallas_call(
        embed_kernel,
        out_shape=jax.ShapeDtypeStruct((n_pad, emb_dim), emb_weight.dtype),
        grid_spec=pltpu.PrefetchScalarGridSpec(
            num_scalar_prefetch=0,
            grid=(n_pad // tpb,),
            in_specs=[
                # per-block token ids (staged into VMEM block by block)
                pl.BlockSpec((tpb, 1), lambda i: (i, 0)),
                # whole table; constant index_map keeps the block resident
                pl.BlockSpec((ntoken, emb_dim), lambda i: (0, 0)),
            ],
            out_specs=pl.BlockSpec((tpb, emb_dim), lambda i: (i, 0)),
        ),
        compiler_params=pltpu.CompilerParams(
            dimension_semantics=("parallel",),
            vmem_limit_bytes=vmem_bytes,
        ),
    )(idx2d, emb_weight)

    return out[:N].reshape(B, L, emb_dim)


if __name__ == "__main__":
    key = jax.random.PRNGKey(0)
    k_emb, k_idx, k_idx2 = jax.random.split(key, 3)

    ntoken, emb_dim = 64, 128
    B, L = 2, 8

    # deterministic "init_emb" (stands in for the pretrained numpy weights)
    init_emb = jax.random.normal(k_emb, (ntoken, emb_dim), dtype=jnp.float32)

    # token indices, including the padding row ntoken-1 (padding_idx=-1)
    x = jax.random.randint(k_idx, (B, L), 0, ntoken, dtype=jnp.int32)
    x = x.at[0, -1].set(ntoken - 1)
    x = x.at[1, -1].set(ntoken - 1)

    # NOTE: self.drop = nn.Dropout(0.0) applied to indices is an identity.
    out = jax.block_until_ready(word_embedding(x, init_emb))
    ref = init_emb[x]
    assert out.shape == (B, L, emb_dim)
    assert jnp.allclose(out, ref, rtol=1e-5, atol=1e-5), "mismatch (small case)"

    # second case: multi-block grid + remainder padding (N = 288 -> 2 blocks)
    B2, L2 = 3, 96
    x2 = jax.random.randint(k_idx2, (B2, L2), 0, ntoken, dtype=jnp.int32)
    out2 = jax.block_until_ready(word_embedding(x2, init_emb))
    ref2 = init_emb[x2]
    assert out2.shape == (B2, L2, emb_dim)
    assert jnp.allclose(out2, ref2, rtol=1e-5, atol=1e-5), "mismatch (tiled case)"

    print("KERNEL_OK")
</pallas_src>

<mosaic_0001>
module attributes {stable_mosaic.version = 11 : i64} {
  func.func @embed_kernel(%arg0: i32, %arg1: memref<16x1xi32, #tpu.memory_space<vmem>>, %arg2: memref<64x128xf32, #tpu.memory_space<vmem>>, %arg3: memref<16x128xf32, #tpu.memory_space<vmem>>) attributes {dimension_semantics = [#tpu.dimension_semantics<parallel>], iteration_bounds = array<i64: 1>, scalar_prefetch = 0 : i64, scratch_operands = 0 : i64, tpu.core_type = #tpu.core_type<tc>, window_params = [{transform_indices = @transform_0, window_bounds = array<i64: 16, 1>}, {pipeline_mode = #tpu.pipeline_mode<synchronous>, transform_indices = @transform_1, window_bounds = array<i64: 64, 128>}, {transform_indices = @transform_2, window_bounds = array<i64: 16, 128>}]} {
    %c0 = arith.constant 0 : index
    %c0_0 = arith.constant 0 : index
    %0 = vector.load %arg1[%c0, %c0_0] : memref<16x1xi32, #tpu.memory_space<vmem>>, vector<16x1xi32>
    %c0_i32 = arith.constant 0 : i32
    %1 = vector.broadcast %c0_i32 : i32 to vector<16x1xi32>
    %2 = arith.cmpi slt, %0, %1 : vector<16x1xi32>
    %c63_i32 = arith.constant 63 : i32
    %3 = vector.broadcast %c63_i32 : i32 to vector<16x1xi32>
    %4 = arith.select %2, %3, %0 : vector<16x1xi1>, vector<16x1xi32>
    %c0_i32_1 = arith.constant 0 : i32
    %c63_i32_2 = arith.constant 63 : i32
    %5 = vector.broadcast %c0_i32_1 : i32 to vector<16x1xi32>
    %6 = arith.maxsi %5, %4 : vector<16x1xi32>
    %7 = vector.broadcast %c63_i32_2 : i32 to vector<16x1xi32>
    %8 = arith.minsi %7, %6 : vector<16x1xi32>
    %9 = tpu.iota {dimensions = array<i32: 1>} : vector<16x64xi32>
    %10 = vector.broadcast %8 : vector<16x1xi32> to vector<16x64xi32>
    %11 = arith.cmpi eq, %9, %10 : vector<16x64xi32>
    %12 = arith.extui %11 : vector<16x64xi1> to vector<16x64xi32>
    %13 = arith.sitofp %12 : vector<16x64xi32> to vector<16x64xf32>
    %c0_3 = arith.constant 0 : index
    %c0_4 = arith.constant 0 : index
    %14 = vector.load %arg2[%c0_3, %c0_4] : memref<64x128xf32, #tpu.memory_space<vmem>>, vector<64x128xf32>
    %cst = arith.constant dense<0.000000e+00> : vector<16x128xf32>
    %15 = tpu.matmul %13, %14, %cst {dimension_numbers = #tpu.dot_dimension_numbers<[1], [0], [0], [1], [0, 0, 1, 1], [], []>, precision = #tpu.contract_precision<fp32>} : vector<16x64xf32>, vector<64x128xf32>, vector<16x128xf32> -> vector<16x128xf32>
    %c0_5 = arith.constant 0 : index
    %c0_6 = arith.constant 0 : index
    %16 = vector.load %arg3[%c0_5, %c0_6] : memref<16x128xf32, #tpu.memory_space<vmem>>, vector<16x128xf32>
    tpu.vector_store %arg3[%c0_5, %c0_6], %15 {strides = array<i32>} : memref<16x128xf32, #tpu.memory_space<vmem>>, vector<16x128xf32>,
    return
  }
  func.func @transform_0(%arg0: i32) -> (i32, i32) {
    %c0_i32 = arith.constant 0 : i32
    %c0_i32_0 = arith.constant 0 : i32
    return %arg0, %c0_i32 : i32, i32
  }
  func.func @transform_1(%arg0: i32) -> (i32, i32) {
    %c0_i32 = arith.constant 0 : i32
    %c0_i32_0 = arith.constant 0 : i32
    %c0_i32_1 = arith.constant 0 : i32
    return %c0_i32, %c0_i32_0 : i32, i32
  }
  func.func @transform_2(%arg0: i32) -> (i32, i32) {
    %c0_i32 = arith.constant 0 : i32
    %c0_i32_0 = arith.constant 0 : i32
    return %arg0, %c0_i32 : i32, i32
  }
}

</mosaic_0001>

<bundles_post_ra>
// kernel: tpu_custom_call.1
= control target key start
LH: loop header
LB: loop body
LE: loop exit
PB: predicated region body
PF: predicated region fallthrough
CT: control target
= control target key end

     0   :  { %7 = vsyncpa [#allocation3], 0  ;;  %s1112_s0 = inlined_call_operand.vmem [shape: s32[16,1], index: 0, kind: input, shape index: {}]   ;;  %s1113_s1 = inlined_call_operand.hbm [shape: f32[64,128], index: 1, kind: input, shape index: {}]   ;;  %s1114_s2 = inlined_call_operand.hbm [shape: f32[16,128], index: 2, kind: output, shape index: {}]  }
   0x1   :  { %8 = vsyncpa [#allocation4], 0  ;;  %s1011_s9 = smov [#allocation2]   ;;  %s963_s13 = scalar_lea.hbm %s1113_s1, 1024 }
   0x2   :  { %s16_s10 = sshll.u32 %s1011_s9, 4  ;;  %p964_p0 = scmp.ne.s32.totalorder %s1113_s1, %s963_s13  ;;  %s17_s10 = int_to_ptr.vmem [resolvable:$true] %s16_s10 }
   0x3   :  { %p967_p1 = scmp.lt.u32.totalorder %s963_s13, %s1113_s1 }
   0x5   :  { %p969_p2 = pnand %p967_p1, %p964_p0 }
   0x7   :  { %972 = shalt.err (!%p969_p2)
}
   0x8   :  { %s973_s18 = scalar_lea.vmem %s17_s10, 1024  ;;  %p978_p4 = scmp.lt.s32.totalorder %s17_s10, %s17_s10 }
   0x9   :  { %p974_p3 = scmp.ne.s32.totalorder %s17_s10, %s973_s18  ;;  %p979_p5 = scmp.lt.s32.totalorder %s973_s18, %s973_s18 }
   0xb   :  { %p980_p6 = por %p979_p5, %p978_p4 }
   0xd   :  { %p981_p7 = pnand %p980_p6, %p974_p3 }
   0xf   :  { %984 = shalt.err (!%p981_p7)
}
  0x10   :  { %s1012_s19 = smov 128   ;;  %s1013_s20 = smov 8  }
  0x11   :  { %22 = dma.hbm_to_vmem [thread:$0]  %s1113_s1, 1024, %s17_s10, [#allocation3], %s1012_s19, %s1012_s19, %s1013_s20  }
  0x12   :  { %1007 = dma.done.wait [#allocation3], 1024  }
  0x13   :  { %1008 = vsyncadd [#allocation3], 4294966272  ;;  %v1014_v0 = vmov 0   ;;  %v26_v1 = vld [vmem:[%s1112_s0] sm:$0xff]  ;;  %v27_v2 = vld [vmem:[%s1112_s0 + $0x8] sm:$0xff]  ;;  %vm62_vm6 = vcmask 523264  }
  0x14   :  { %962 = vset.pattern.permute.xlu0 %v1014_v0  ;;  %v54_v3 = vld [vmem:[#allocation2] sm:$0xff]  ;;  %vm28_vm0 = vcmp.lt.s32.totalorder %v26_v1, 0  ;;  %vm29_vm1 = vcmp.lt.s32.totalorder %v27_v2, 0  ;;  %v55_v4 = vld [vmem:[#allocation2 + $0x8] sm:$0xff]  ;;  %v56_v6 = vld [vmem:[#allocation2 + $0x10] sm:$0xff]  ;;  %s1016_s0 = smov [#allocation5]  }
  0x15   :  { %v70_v5 = vand.u32 4294901760, %v54_v3  ;;  %v57_v7 = vld [vmem:[#allocation2 + $0x18] sm:$0xff]  ;;  %v30_v8 = vsel %vm28_vm0, 63, %v26_v1  ;;  %v31_v9 = vsel %vm29_vm1, 63, %v27_v2  ;;  %v73_v10 = vand.u32 4294901760, %v55_v4  ;;  %v58_v16 = vld [vmem:[#allocation2 + $0x20] sm:$0xff] }
  0x16   :  { %v76_v11 = vand.u32 4294901760, %v56_v6  ;;  %vm32_vm2 = vcmp.gt.s32.totalorder %v30_v8, 0  ;;  %vm34_vm3 = vcmp.gt.s32.totalorder %v31_v9, 0  ;;  %v79_v12 = vand.u32 4294901760, %v57_v7  ;;  %v59_v17 = vld [vmem:[#allocation2 + $0x28] sm:$0xff]  ;;  %v60_v24 = vld [vmem:[#allocation2 + $0x30] sm:$0xff] }
  0x17   :  { %v33_v13 = vsel %vm32_vm2, %v30_v8, 0  ;;  %v35_v14 = vsel %vm34_vm3, %v31_v9, 0  ;;  %v1053_v15 = vpack.c.bf16 %v73_v10, %v70_v5  ;;  %v82_v19 = vand.u32 4294901760, %v58_v16  ;;  %v61_v25 = vld [vmem:[#allocation2 + $0x38] sm:$0xff]  ;;  %s656_s1 = sshll.u32 %s1016_s0, 4  ;;  %s657_s1 = int_to_ptr.vmem [resolvable:$true] %s656_s1 }
  0x18   :  { %vm36_vm4 = vcmp.lt.s32.totalorder %v33_v13, 63  ;;  %vm38_vm5 = vcmp.lt.s32.totalorder %v35_v14, 63  ;;  %v1055_v18 = vpack.c.bf16 %v79_v12, %v76_v11  ;;  %v85_v21 = vand.u32 4294901760, %v59_v17  ;;  %s985_s27 = scalar_lea.vmem %s657_s1, 256  ;;  %p990_p9 = scmp.lt.s32.totalorder %s657_s1, %s657_s1 }
  0x19   :  { %v37_v20 = vsel %vm36_vm4, %v33_v13, 63  ;;  %899 = vmatprep.subr.bf16.mxu0 %v1053_v15  ;;  %851 = vmatprep.subr.bf16.mxu1 %v1053_v15  ;;  %v39_v22 = vsel %vm38_vm5, %v35_v14, 63  ;;  %v88_v26 = vand.u32 4294901760, %v60_v24  ;;  %v91_v27 = vand.u32 4294901760, %v61_v25  ;;  %p986_p8 = scmp.ne.s32.totalorder %s657_s1, %s985_s27  ;;  %p991_p10 = scmp.lt.s32.totalorder %s985_s27, %s985_s27 }
  0x1a   :  { %43 = vperm.xlu0 %962, %v37_v20   ;;  %901 = vmatpush3.bf16.msra.mxu0 %v1053_v15  ;;  %v1062_v23 = vpack.c.bf16 %v85_v21, %v82_v19  ;;  %v164_v28 = vsub.f32 %v54_v3, %v70_v5  ;;  %v171_v29 = vsub.f32 %v55_v4, %v73_v10  ;;  %v40_v9 = vlaneseq }
  0x1b   :  { %903 = vmatprep.subr.bf16.mxu0 %v1055_v18  ;;  %853 = vmatpush3.bf16.msra.mxu1 %v1053_v15  ;;  %v1068_v30 = vpack.c.bf16 %v91_v27, %v88_v26  ;;  %v178_v36 = vsub.f32 %v56_v6, %v76_v11  ;;  %v185_v37 = vsub.f32 %v57_v7, %v79_v12  ;;  %v1015_v12 = vmov 0.0   ;;  %p992_p11 = por %p991_p10, %p990_p9 }
  0x1c   :  { %855 = vmatprep.subr.bf16.mxu1 %v1055_v18  ;;  %v165_v31 = vand.u32 4294901760, %v164_v28  ;;  %v172_v32 = vand.u32 4294901760, %v171_v29  ;;  %v192_v44 = vsub.f32 %v58_v16, %v82_v19  ;;  %v199_v47 = vsub.f32 %v59_v17, %v85_v21 }
  0x1d   :  { %v179_v40 = vand.u32 4294901760, %v178_v36  ;;  %v186_v41 = vand.u32 4294901760, %v185_v37  ;;  %v206_v53 = vsub.f32 %v60_v24, %v88_v26  ;;  %v213_v54 = vsub.f32 %v61_v25, %v91_v27  ;;  %p993_p12 = pnand %p992_p11, %p986_p8 }
  0x1e   :  { %46 = vperm.xlu0 %962, %v39_v22   ;;  %905 = vmatpush3.bf16.msra.mxu0 %v1055_v18  ;;  %v1072_v33 = vpack.c.bf16 %v172_v32, %v165_v31  ;;  %v166_v34 = vsub.f32 %v164_v28, %v165_v31  ;;  %v173_v35 = vsub.f32 %v171_v29, %v172_v32  ;;  %v193_v49 = vand.u32 4294901760, %v192_v44 }
  0x1f   :  { %907 = vmatprep.subr.bf16.mxu0 %v1062_v23  ;;  %857 = vmatpush3.bf16.msra.mxu1 %v1055_v18  ;;  %v180_v43 = vsub.f32 %v178_v36, %v179_v40  ;;  %v918_v45 = vpack.c.bf16 %v186_v41, %v179_v40  ;;  %v187_v46 = vsub.f32 %v185_v37, %v186_v41  ;;  %v200_v51 = vand.u32 4294901760, %v199_v47 }
  0x20   :  { %859 = vmatprep.subr.bf16.mxu1 %v1062_v23  ;;  %v167_v38 = vand.u32 4294901760, %v166_v34  ;;  %v174_v39 = vand.u32 4294901760, %v173_v35  ;;  %v194_v52 = vsub.f32 %v192_v44, %v193_v49  ;;  %v207_v59 = vand.u32 4294901760, %v206_v53 }
  0x21   :  { %v181_v48 = vand.u32 4294901760, %v180_v43  ;;  %v188_v50 = vand.u32 4294901760, %v187_v46  ;;  %v922_v56 = vpack.c.bf16 %v200_v51, %v193_v49  ;;  %v201_v57 = vsub.f32 %v199_v47, %v200_v51 }
  0x22   :  { %909 = vmatpush3.bf16.msra.mxu0 %v1062_v23  ;;  %v866_v42 = vpack.c.bf16 %v174_v39, %v167_v38  ;;  %v195_v58 = vand.u32 4294901760, %v194_v52  ;;  %v214_v60 = vand.u32 4294901760, %v213_v54  ;;  %v208_v63 = vsub.f32 %v206_v53, %v207_v59 }
  0x23   :  { %911 = vmatprep.subr.bf16.mxu0 %v1068_v30  ;;  %861 = vmatpush3.bf16.msra.mxu1 %v1062_v23  ;;  %v870_v55 = vpack.c.bf16 %v188_v50, %v181_v48  ;;  %v202_v61 = vand.u32 4294901760, %v201_v57  ;;  %v882_v5 = vpack.c.bf16 %v171_v29, %v164_v28  ;;  %v886_v6 = vpack.c.bf16 %v185_v37, %v178_v36 }
  0x24   :  { %863 = vmatprep.subr.bf16.mxu1 %v1068_v30  ;;  %v926_v62 = vpack.c.bf16 %v214_v60, %v207_v59  ;;  %v215_v0 = vsub.f32 %v213_v54, %v214_v60  ;;  %v209_v2 = vand.u32 4294901760, %v208_v63  ;;  %v890_v7 = vpack.c.bf16 %v199_v47, %v192_v44 }
  0x25   :  { %v874_v1 = vpack.c.bf16 %v202_v61, %v195_v58  ;;  %v894_v8 = vpack.c.bf16 %v213_v54, %v206_v53  ;;  %v41_v10 = vand.u32 127, %v40_v9 }
  0x26   :  { %913 = vmatpush3.bf16.msra.mxu0 %v1068_v30  ;;  %v216_v3 = vand.u32 4294901760, %v215_v0 }
  0x27   :  { %915 = vmatprep.subr.bf16.mxu0 %v1072_v33  ;;  %865 = vmatpush3.bf16.msra.mxu1 %v1068_v30 }
  0x28   :  { %867 = vmatprep.subr.bf16.mxu1 %v866_v42  ;;  %v878_v4 = vpack.c.bf16 %v216_v3, %v209_v2 }
  0x99   :  { %v44_v11 = vpop.permute.xlu0 %43 }
  0x9a   :  { %vm48_vm7 = vcmp.eq.s32.totalorder %v41_v10, %v44_v11 }
  0x9b   :  { %v668_v13 = vsel %vm48_vm7, 1.0, %v1015_v12 }
  0x9c   :  { %v64_v14 = vsel %vm62_vm6, %v668_v13, 0 }
  0x9d   :  { %v143_v16 = vsub.f32 %v64_v14, %v64_v14  ;;  %v47_v17 = vpop.permute.xlu0 %46 }
  0x9e   :  { %vm49_vm8 = vcmp.eq.s32.totalorder %v41_v10, %v47_v17 }
  0x9f   :  { %v669_v19 = vsel %vm49_vm8, 1.0, %v1015_v12  ;;  %v144_v20 = vand.u32 4294901760, %v143_v16 }
  0xa0   :  { %v67_v21 = vsel %vm62_vm6, %v669_v19, 0 }
  0xa1   :  { %v153_v22 = vsub.f32 %v67_v21, %v67_v21  ;;  %809 = vmatprep.mubr.f32.mxu0 %v144_v20  ;;  %v145_v24 = vsub.f32 %v143_v16, %v144_v20 }
  0xa3   :  { %v146_v25 = vand.u32 4294901760, %v145_v24  ;;  %v154_v26 = vand.u32 4294901760, %v153_v22 }
  0xa5   :  { %752 = vmatprep.mubr.f32.mxu1 %v146_v25  ;;  %810 = vmatmul.mubr.f32.vlgmr.msra.gmra.mrb[0].mxu0 %v154_v26  ;;  %v155_v27 = vsub.f32 %v153_v22, %v154_v26 }
  0xa6   :  { %917 = vmatpush3.bf16.msra.mxu0 %v1072_v33  ;;  %828 = vmatprep.mubr.msk.f32.mxu0 %vm62_vm6, %v668_v13 }
  0xa7   :  { %919 = vmatprep.subr.bf16.mxu0 %v918_v45  ;;  %v156_v28 = vand.u32 4294901760, %v155_v27 }
  0xa9   :  { %753 = vmatmul.mubr.f32.vlgmr.msra.gmra.mrb[0].mxu1 %v156_v28 }
  0xaa   :  { %869 = vmatpush3.bf16.msra.mxu1 %v866_v42  ;;  %921 = vmatpush3.bf16.msra.mxu0 %v918_v45 }
  0xab   :  { %771 = vmatprep.mubr.msk.f32.mxu1 %vm62_vm6, %v668_v13  ;;  %871 = vmatprep.subr.bf16.mxu1 %v870_v55 }
  0xac   :  { %923 = vmatprep.subr.bf16.mxu0 %v922_v56 }
  0xae   :  { %873 = vmatpush3.bf16.msra.mxu1 %v870_v55  ;;  %925 = vmatpush3.bf16.msra.mxu0 %v922_v56 }
  0xaf   :  { %875 = vmatprep.subr.bf16.mxu1 %v874_v1  ;;  %927 = vmatprep.subr.bf16.mxu0 %v926_v62 }
  0xb2   :  { %877 = vmatpush3.bf16.msra.mxu1 %v874_v1  ;;  %929 = vmatpush3.bf16.msra.mxu0 %v926_v62 }
  0xb3   :  { %879 = vmatprep.subr.bf16.mxu1 %v878_v4  ;;  %931 = vmatprep.subr.bf16.mxu0 %v1053_v15 }
  0xb5   :  { %829 = vmatmul.mubr.msk.f32.vlgmr.msra.gmra.mrb[0].mxu0 %vm62_vm6, %v669_v19 }
  0xb6   :  { %881 = vmatpush3.bf16.msra.mxu1 %v878_v4  ;;  %933 = vmatpush3.bf16.msra.mxu0 %v1053_v15 }
  0xb7   :  { %847 = vmatprep.mubr.msk.f32.mxu0 %vm62_vm6, %v668_v13  ;;  %883 = vmatprep.subr.bf16.mxu1 %v882_v5 }
  0xb8   :  { %935 = vmatprep.subr.bf16.mxu0 %v1055_v18 }
  0xb9   :  { %772 = vmatmul.mubr.msk.f32.vlgmr.msra.gmra.mrb[0].mxu1 %vm62_vm6, %v669_v19 }
  0xba   :  { %885 = vmatpush3.bf16.msra.mxu1 %v882_v5  ;;  %790 = vmatprep.mubr.f32.mxu1 %v143_v16 }
  0xbb   :  { %937 = vmatpush3.bf16.msra.mxu0 %v1055_v18  ;;  %887 = vmatprep.subr.bf16.mxu1 %v886_v6 }
  0xbc   :  { %939 = vmatprep.subr.bf16.mxu0 %v1062_v23 }
  0xbe   :  { %889 = vmatpush3.bf16.msra.mxu1 %v886_v6 }
  0xbf   :  { %941 = vmatpush3.bf16.msra.mxu0 %v1062_v23  ;;  %891 = vmatprep.subr.bf16.mxu1 %v890_v7 }
  0xc0   :  { %943 = vmatprep.subr.bf16.mxu0 %v1068_v30 }
  0xc2   :  { %893 = vmatpush3.bf16.msra.mxu1 %v890_v7 }
  0xc3   :  { %945 = vmatpush3.bf16.msra.mxu0 %v1068_v30  ;;  %895 = vmatprep.subr.bf16.mxu1 %v894_v8 }
  0xc6   :  { %848 = vmatmul.mubr.msk.f32.vlgmr.msra.gmra.mrb[0].mxu0 %vm62_vm6, %v669_v19  ;;  %897 = vmatpush3.bf16.msra.mxu1 %v894_v8 }
  0xc9   :  { %791 = vmatmul.mubr.f32.vlgmr.msra.gmra.mrb[0].mxu1 %v153_v22 }
 0x199   :  { %v849_v15 = vpop.f32.mrb[0].mxu0 }
 0x19a   :  { %v639_v29 = vpop.f32.mrb[1].mxu0 }
 0x19c   :  { %v792_v18 = vpop.f32.mrb[0].mxu1 }
 0x19d   :  { %v946_v31 = vadd.f32 %v849_v15, %v792_v18  ;;  %v363_v32 = vpop.f32.mrb[1].mxu1 }
 0x19e   :  { %v947_v33 = vadd.f32 %v639_v29, %v363_v32 }
 0x19f   :  { %650 = vst [vmem:[#allocation5 + $0x8] sm:$0xff] %v946_v31 }
 0x1a0   :  { %649 = vst [vmem:[#allocation5] sm:$0xff] %v947_v33 }
 0x1a1   :  { %996 = shalt.err (!%p993_p12)
}
 0x1a2   :  { %s997_s30 = scalar_lea.hbm %s1114_s2, 256 }
 0x1a3   :  { %p998_p13 = scmp.ne.s32.totalorder %s1114_s2, %s997_s30  ;;  %p1001_p0 = scmp.lt.u32.totalorder %s997_s30, %s1114_s2 }
 0x1a5   :  { %p1003_p1 = pnand %p1001_p0, %p998_p13 }
 0x1a7   :  { %1006 = shalt.err (!%p1003_p1)
}
 0x1a8   :  { %662 = dma.vmem_to_hbm [thread:$0]  %s657_s1, 256, %s1114_s2, [#allocation4], %s1012_s19, %s1012_s19, %s1013_s20  }
 0x1a9   :  { %1009 = dma.done.wait [#allocation4], 256  }
 0x1aa   :  { %1010 = vsyncadd [#allocation4], 4294967040 }
 0x1ab   :  { %666 = vsyncpa [#allocation3], 1 }
 0x1ac   :  { %667 = vsyncpa [#allocation4], 1 }

</bundles_post_ra>
